<compile_context>
chip_gen: v7x
topology: tpu7x:2x2x1
jax: 0.10.0
libtpu: 0.0.40
codegen_flags: <defaults>
</compile_context>

<pallas_src>
import functools

import jax
import jax.numpy as jnp
from jax.experimental import pallas as pl
from jax.experimental.pallas import tpu as pltpu


_SINGLE_TILE_MAX_B = 512  # below this, one tile + fused BN (launch-bound regime)


def _sigmoid(x):
    # tanh form keeps the transcendental on the EUP slot; numerically
    # equivalent to 1 / (1 + exp(-x)).
    return 0.5 * (jnp.tanh(0.5 * x) + 1.0)


def _mlp_head(x_nat, w_list, b_list, wl_col):
    """x_nat: [tb, num_items] (native layout) -> pre-BN [1, tb]."""
    # First layer fuses the transpose: contract on x's last (feature) axis.
    h = jax.lax.dot_general(
        w_list[0], x_nat,
        dimension_numbers=(((1,), (1,)), ((), ())),
        preferred_element_type=jnp.float32) + b_list[0]          # [fc1, tb]
    h = _sigmoid(h)
    for w, b in zip(w_list[1:], b_list[1:]):
        h = _sigmoid(jnp.dot(w, h, preferred_element_type=jnp.float32) + b)
    # N = 1 output linear as VPU multiply + sublane reduce.  `bl` dropped
    # (BatchNorm affine=False is shift-invariant).
    return jnp.sum(wl_col * h, axis=0, keepdims=True)            # [1, tb]


def _batchnorm_full(y):
    # BatchNorm1d(1, eps=0, momentum=0, affine=False), training mode, all
    # lanes real (single-tile path: tb == B).
    mean = jnp.mean(y, axis=-1, keepdims=True)
    d = y - mean
    var = jnp.mean(d * d, axis=-1, keepdims=True)
    # TODO(synk): eps=0 exactly as in the PyTorch module; zero batch variance
    # yields inf/NaN here just as it would in PyTorch.
    return d * jax.lax.rsqrt(var)


# ---- streaming kernels (multi-tile path, BN done in a second tiny kernel) ----

def _stream_kernel_d1(x_ref, w1_ref, b1_ref, wl_ref, y_ref):
    y_ref[...] = _mlp_head(x_ref[...], (w1_ref[...],), (b1_ref[...],),
                           wl_ref[...])


def _stream_kernel_d3(x_ref, w1_ref, b1_ref, w2_ref, b2_ref,
                      w3_ref, b3_ref, wl_ref, y_ref):
    y_ref[...] = _mlp_head(x_ref[...],
                           (w1_ref[...], w2_ref[...], w3_ref[...]),
                           (b1_ref[...], b2_ref[...], b3_ref[...]),
                           wl_ref[...])


# ---- fused kernels (single-tile path: MLP + BatchNorm in one launch) ----

def _fused_kernel_d1(x_ref, w1_ref, b1_ref, wl_ref, o_ref):
    y = _mlp_head(x_ref[...], (w1_ref[...],), (b1_ref[...],), wl_ref[...])
    o_ref[...] = _batchnorm_full(y)


def _fused_kernel_d3(x_ref, w1_ref, b1_ref, w2_ref, b2_ref,
                     w3_ref, b3_ref, wl_ref, o_ref):
    y = _mlp_head(x_ref[...],
                  (w1_ref[...], w2_ref[...], w3_ref[...]),
                  (b1_ref[...], b2_ref[...], b3_ref[...]),
                  wl_ref[...])
    o_ref[...] = _batchnorm_full(y)


def _batchnorm_kernel(y_ref, o_ref, *, batch):
    # Multi-tile path: normalize over the real batch lanes only.  Padded /
    # boundary lanes may hold undefined values (we never zero-pad x in HBM),
    # so use jnp.where (not y*mask) to keep NaN out of the statistics.
    y = y_ref[...]                                               # [1, b_pad]
    lane = jax.lax.broadcasted_iota(jnp.int32, y.shape, 1)
    valid = lane < batch
    inv_b = jnp.float32(1.0 / batch)
    mean = jnp.sum(jnp.where(valid, y, 0.0), axis=-1, keepdims=True) * inv_b
    d = jnp.where(valid, y - mean, 0.0)
    var = jnp.sum(d * d, axis=-1, keepdims=True) * inv_b
    # TODO(synk): eps=0 as in the PyTorch module (inf/NaN if var == 0).
    o_ref[...] = (y - mean) * jax.lax.rsqrt(var)


def _choose_batch_tile(num_items, batch):
    """Lane/sublane batch tile for the multi-tile path (~8 MiB of f32 x)."""
    budget_bytes = 8 * 1024 * 1024
    tb = budget_bytes // (num_items * 4)
    tb = max(128, (tb // 128) * 128)
    # Always >= 2 tiles so the "parallel" grid axis shards across both v7x TCs.
    half = (((batch + 1) // 2 + 127) // 128) * 128
    # TODO(synk): for pathologically large num_items (> ~20k features) even a
    # 128-row tile exceeds the 40 MiB scoped-VMEM request; raise the limit or
    # tile the feature axis in that regime.
    return min(tb, half, 32768)


def person_net_forward(x, params, depth=1):
    """Full PersonNet forward (training-mode BatchNorm) via Pallas kernels."""
    x = jnp.asarray(x, jnp.float32)
    B, num_items = x.shape

    if depth == 1:
        weights = (params["w1"], params["b1"], params["wl"].reshape(-1, 1))
        stream_kernel, fused_kernel = _stream_kernel_d1, _fused_kernel_d1
    elif depth == 3:
        weights = (params["w1"], params["b1"], params["w2"], params["b2"],
                   params["w3"], params["b3"], params["wl"].reshape(-1, 1))
        stream_kernel, fused_kernel = _stream_kernel_d3, _fused_kernel_d3
    else:
        raise ValueError("depth must be 1 or 3")

    # Constant index maps -> weights/biases DMA'd once, VMEM-resident.
    def resident(w):
        return pl.BlockSpec(w.shape, lambda i: (0, 0))

    cp = pltpu.CompilerParams(
        dimension_semantics=("parallel",),
        vmem_limit_bytes=40 * 1024 * 1024)

    if B <= _SINGLE_TILE_MAX_B:
        # Launch-overhead-dominated regime: one kernel, BN fused, no HBM
        # round trip of the pre-BN vector, no padding anywhere.
        y = pl.pallas_call(
            fused_kernel,
            out_shape=jax.ShapeDtypeStruct((1, B), jnp.float32),
            grid=(1,),
            in_specs=[pl.BlockSpec((B, num_items), lambda i: (0, 0))]
                     + [resident(w) for w in weights],
            out_specs=pl.BlockSpec((1, B), lambda i: (0, 0)),
            compiler_params=cp,
        )(x, *weights)
        return y.T                                               # [B, 1]

    # Streaming regime: tile the batch; x is read straight from its native
    # [B, num_items] layout (no host-side transpose/pad copy).
    tb = _choose_batch_tile(num_items, B)
    n_tiles = pl.cdiv(B, tb)
    b_pad = n_tiles * tb

    y_raw = pl.pallas_call(
        stream_kernel,
        out_shape=jax.ShapeDtypeStruct((1, b_pad), jnp.float32),
        grid=(n_tiles,),
        in_specs=[pl.BlockSpec((tb, num_items), lambda i: (i, 0))]
                 + [resident(w) for w in weights],
        out_specs=pl.BlockSpec((1, tb), lambda i: (0, i)),
        compiler_params=cp,
    )(x, *weights)

    vmem = pl.BlockSpec(memory_space=pltpu.MemorySpace.VMEM)
    y = pl.pallas_call(
        functools.partial(_batchnorm_kernel, batch=B),
        out_shape=jax.ShapeDtypeStruct((1, b_pad), jnp.float32),
        in_specs=[vmem],
        out_specs=vmem,
    )(y_raw)

    return y[:, :B].T                                            # [B, 1]


def init_person_net_params(key, num_items, depth=1):
    """PyTorch-native param layout: W is [out, in], b is [out, 1]."""
    fc1_dim = max(num_items // 2, 2)
    fc2_dim = max(num_items // 4, 2)
    fc3_dim = max(num_items // 8, 2)

    def linear(k, fan_in, fan_out):
        kw, kb = jax.random.split(k)
        bound = 1.0 / (fan_in ** 0.5)
        w = jax.random.uniform(kw, (fan_out, fan_in), jnp.float32, -bound, bound)
        b = jax.random.uniform(kb, (fan_out, 1), jnp.float32, -bound, bound)
        return w, b

    keys = jax.random.split(key, 4)
    params = {}
    params["w1"], params["b1"] = linear(keys[0], num_items, fc1_dim)
    if depth == 3:
        params["w2"], params["b2"] = linear(keys[1], fc1_dim, fc2_dim)
        params["w3"], params["b3"] = linear(keys[2], fc2_dim, fc3_dim)
        params["wl"], params["bl"] = linear(keys[3], fc3_dim, 1)
    else:
        params["wl"], params["bl"] = linear(keys[3], fc1_dim, 1)
    return params


def person_net_reference(x, params, depth=1):
    """Pure-JAX reference (keeps the + bl that the kernel legally drops)."""
    h = jax.nn.sigmoid(x @ params["w1"].T + params["b1"].T)
    if depth == 3:
        h = jax.nn.sigmoid(h @ params["w2"].T + params["b2"].T)
        h = jax.nn.sigmoid(h @ params["w3"].T + params["b3"].T)
    y = h @ params["wl"].T + params["bl"].T
    mean = jnp.mean(y, axis=0, keepdims=True)
    var = jnp.mean((y - mean) ** 2, axis=0, keepdims=True)
    return (y - mean) * jax.lax.rsqrt(var)


if __name__ == "__main__":
    num_items = 32
    key = jax.random.PRNGKey(0)
    k_x, k_x2, k_p1, k_p3 = jax.random.split(key, 4)

    # --- small batch (fused single-tile path), depth = 1 and 3 ---
    batch = 8
    x = jax.random.normal(k_x, (batch, num_items), jnp.float32)

    params1 = init_person_net_params(k_p1, num_items, depth=1)
    out1 = jax.block_until_ready(person_net_forward(x, params1, depth=1))
    ref1 = person_net_reference(x, params1, depth=1)
    assert out1.shape == (batch, 1)
    assert jnp.allclose(out1, ref1, atol=1e-3, rtol=1e-3)

    params3 = init_person_net_params(k_p3, num_items, depth=3)
    out3 = jax.block_until_ready(person_net_forward(x, params3, depth=3))
    ref3 = person_net_reference(x, params3, depth=3)
    assert out3.shape == (batch, 1)
    assert jnp.allclose(out3, ref3, atol=1e-3, rtol=1e-3)

    # --- larger, non-tile-divisible batch (streaming multi-tile path) ---
    batch2 = 1000
    x2 = jax.random.normal(k_x2, (batch2, num_items), jnp.float32)
    out1b = jax.block_until_ready(person_net_forward(x2, params1, depth=1))
    ref1b = person_net_reference(x2, params1, depth=1)
    assert out1b.shape == (batch2, 1)
    assert jnp.allclose(out1b, ref1b, atol=1e-3, rtol=1e-3)

    print("KERNEL_OK")
</pallas_src>

<mosaic_0001>
module attributes {stable_mosaic.version = 11 : i64} {
  func.func @_fused_kernel_d1(%arg0: i32, %arg1: memref<8x32xf32, #tpu.memory_space<vmem>>, %arg2: memref<16x32xf32, #tpu.memory_space<vmem>>, %arg3: memref<16x1xf32, #tpu.memory_space<vmem>>, %arg4: memref<16x1xf32, #tpu.memory_space<vmem>>, %arg5: memref<1x8xf32, #tpu.memory_space<vmem>>) attributes {dimension_semantics = [#tpu.dimension_semantics<parallel>], iteration_bounds = array<i64: 1>, scalar_prefetch = 0 : i64, scratch_operands = 0 : i64, tpu.core_type = #tpu.core_type<tc>, window_params = [{pipeline_mode = #tpu.pipeline_mode<synchronous>, transform_indices = @transform_0, window_bounds = array<i64: 8, 32>}, {pipeline_mode = #tpu.pipeline_mode<synchronous>, transform_indices = @transform_1, window_bounds = array<i64: 16, 32>}, {pipeline_mode = #tpu.pipeline_mode<synchronous>, transform_indices = @transform_2, window_bounds = array<i64: 16, 1>}, {pipeline_mode = #tpu.pipeline_mode<synchronous>, transform_indices = @transform_3, window_bounds = array<i64: 16, 1>}, {pipeline_mode = #tpu.pipeline_mode<synchronous>, transform_indices = @transform_4, window_bounds = array<i64: 1, 8>}]} {
    %c0 = arith.constant 0 : index
    %c0_0 = arith.constant 0 : index
    %0 = vector.load %arg1[%c0, %c0_0] : memref<8x32xf32, #tpu.memory_space<vmem>>, vector<8x32xf32>
    %c0_1 = arith.constant 0 : index
    %c0_2 = arith.constant 0 : index
    %1 = vector.load %arg2[%c0_1, %c0_2] : memref<16x32xf32, #tpu.memory_space<vmem>>, vector<16x32xf32>
    %c0_3 = arith.constant 0 : index
    %c0_4 = arith.constant 0 : index
    %2 = vector.load %arg3[%c0_3, %c0_4] : memref<16x1xf32, #tpu.memory_space<vmem>>, vector<16x1xf32>
    %c0_5 = arith.constant 0 : index
    %c0_6 = arith.constant 0 : index
    %3 = vector.load %arg4[%c0_5, %c0_6] : memref<16x1xf32, #tpu.memory_space<vmem>>, vector<16x1xf32>
    %cst = arith.constant dense<0.000000e+00> : vector<16x8xf32>
    %4 = tpu.matmul %1, %0, %cst {dimension_numbers = #tpu.dot_dimension_numbers<[1], [1], [0], [0], [0, 0, 1, 0], [], []>} : vector<16x32xf32>, vector<8x32xf32>, vector<16x8xf32> -> vector<16x8xf32>
    %5 = vector.broadcast %2 : vector<16x1xf32> to vector<16x8xf32>
    %6 = arith.addf %4, %5 : vector<16x8xf32>
    %cst_7 = arith.constant 5.000000e-01 : f32
    %7 = vector.broadcast %cst_7 : f32 to vector<16x8xf32>
    %8 = arith.mulf %7, %6 : vector<16x8xf32>
    %9 = math.tanh %8 : vector<16x8xf32>
    %cst_8 = arith.constant 1.000000e+00 : f32
    %10 = vector.broadcast %cst_8 : f32 to vector<16x8xf32>
    %11 = arith.addf %9, %10 : vector<16x8xf32>
    %cst_9 = arith.constant 5.000000e-01 : f32
    %12 = vector.broadcast %cst_9 : f32 to vector<16x8xf32>
    %13 = arith.mulf %12, %11 : vector<16x8xf32>
    %14 = vector.broadcast %3 : vector<16x1xf32> to vector<16x8xf32>
    %15 = arith.mulf %14, %13 : vector<16x8xf32>
    %cst_10 = arith.constant dense<0.000000e+00> : vector<8xf32>
    %16 = vector.multi_reduction <add>, %15, %cst_10 [0] : vector<16x8xf32> to vector<8xf32>
    %17 = vector.shape_cast %16 : vector<8xf32> to vector<1x8xf32>
    %cst_11 = arith.constant dense<0.000000e+00> : vector<1xf32>
    %18 = vector.multi_reduction <add>, %17, %cst_11 [1] : vector<1x8xf32> to vector<1xf32>
    %19 = vector.shape_cast %18 : vector<1xf32> to vector<1x1xf32>
    %cst_12 = arith.constant 8.000000e+00 : f32
    %20 = vector.broadcast %cst_12 : f32 to vector<1x1xf32>
    %21 = arith.divf %19, %20 : vector<1x1xf32>
    %22 = vector.broadcast %21 : vector<1x1xf32> to vector<1x8xf32>
    %23 = arith.subf %17, %22 : vector<1x8xf32>
    %24 = arith.mulf %23, %23 : vector<1x8xf32>
    %cst_13 = arith.constant dense<0.000000e+00> : vector<1xf32>
    %25 = vector.multi_reduction <add>, %24, %cst_13 [1] : vector<1x8xf32> to vector<1xf32>
    %26 = vector.shape_cast %25 : vector<1xf32> to vector<1x1xf32>
    %cst_14 = arith.constant 8.000000e+00 : f32
    %27 = vector.broadcast %cst_14 : f32 to vector<1x1xf32>
    %28 = arith.divf %26, %27 : vector<1x1xf32>
    %29 = math.rsqrt %28 : vector<1x1xf32>
    %30 = vector.broadcast %29 : vector<1x1xf32> to vector<1x8xf32>
    %31 = arith.mulf %23, %30 : vector<1x8xf32>
    %c0_15 = arith.constant 0 : index
    %c0_16 = arith.constant 0 : index
    %32 = vector.load %arg5[%c0_15, %c0_16] : memref<1x8xf32, #tpu.memory_space<vmem>>, vector<1x8xf32>
    tpu.vector_store %arg5[%c0_15, %c0_16], %31 {strides = array<i32>} : memref<1x8xf32, #tpu.memory_space<vmem>>, vector<1x8xf32>,
    return
  }
  func.func @transform_0(%arg0: i32) -> (i32, i32) {
    %c0_i32 = arith.constant 0 : i32
    %c0_i32_0 = arith.constant 0 : i32
    %c0_i32_1 = arith.constant 0 : i32
    return %c0_i32, %c0_i32_0 : i32, i32
  }
  func.func @transform_1(%arg0: i32) -> (i32, i32) {
    %c0_i32 = arith.constant 0 : i32
    %c0_i32_0 = arith.constant 0 : i32
    %c0_i32_1 = arith.constant 0 : i32
    return %c0_i32, %c0_i32_0 : i32, i32
  }
  func.func @transform_2(%arg0: i32) -> (i32, i32) {
    %c0_i32 = arith.constant 0 : i32
    %c0_i32_0 = arith.constant 0 : i32
    %c0_i32_1 = arith.constant 0 : i32
    return %c0_i32, %c0_i32_0 : i32, i32
  }
  func.func @transform_3(%arg0: i32) -> (i32, i32) {
    %c0_i32 = arith.constant 0 : i32
    %c0_i32_0 = arith.constant 0 : i32
    %c0_i32_1 = arith.constant 0 : i32
    return %c0_i32, %c0_i32_0 : i32, i32
  }
  func.func @transform_4(%arg0: i32) -> (i32, i32) {
    %c0_i32 = arith.constant 0 : i32
    %c0_i32_0 = arith.constant 0 : i32
    %c0_i32_1 = arith.constant 0 : i32
    return %c0_i32, %c0_i32_0 : i32, i32
  }
}

</mosaic_0001>

<bundles_post_ra>
// kernel: tpu_custom_call.1
= control target key start
LH: loop header
LB: loop body
LE: loop exit
PB: predicated region body
PF: predicated region fallthrough
CT: control target
= control target key end

     0   :  { %vm35_vm0 = vcmask 261120   ;;  %v224_v5 = vmov 0   ;;  %s288_s0 = inlined_call_operand.vmem [shape: f32[8,32], index: 0, kind: input, shape index: {}]   ;;  %s289_s1 = inlined_call_operand.vmem [shape: f32[16,32], index: 1, kind: input, shape index: {}]   ;;  %s290_s2 = inlined_call_operand.vmem [shape: f32[16,1], index: 2, kind: input, shape index: {}]   ;;  %s291_s3 = inlined_call_operand.vmem [shape: f32[16,1], index: 3, kind: input, shape index: {}]   ;;  %s292_s4 = inlined_call_operand.hbm [shape: f32[1,8], index: 4, kind: output, shape index: {}]  }
   0x1   :  { %v18_v0 = vld [vmem:[%s288_s0] sm:$0xff]  ;;  %v20_v4 = vld [vmem:[%s289_s1 + $0x8] sm:$0xff]  ;;  %192 = vset.pattern.permute.xlu0 %v224_v5 }
   0x2   :  { %v19_v1 = vld [vmem:[%s289_s1] sm:$0xff]  ;;  %185 = vmatprep.subr.msk.mxu0 %vm35_vm0, %v18_v0 }
   0x3   :  { %187 = vmatprep.mubr.msk.f32.mxu0 %vm35_vm0, %v19_v1  ;;  %v21_v2 = vld [vmem:[%s290_s2] sm:$0xff]  ;;  %186 = vmatpush3.xpose.msk.msra.mxu0 %vm35_vm0, %v18_v0 }
   0x4   :  { %v23_v3 = vld [vmem:[%s291_s3] sm:$0xff] }
   0x5   :  { %9 = vsyncpa [#allocation3], 0  ;;  %27 = vperm.xlu0 %192, %v21_v2   ;;  %193 = vset.pattern.permute.xlu1 %v224_v5  ;;  %v22_v6 = vld [vmem:[%s290_s2 + $0x8] sm:$0xff]  ;;  %vm140_vm1 = vcmask 64512   ;;  %s225_s1 = smov [#allocation2]   ;;  %vm163_vm2 = vcmask 57344  }
   0x6   :  { %130 = vperm.xlu1 %193, %v23_v3   ;;  %188 = vmatmul.mubr.msk.f32.vlgmr.msra.gmra.mrb[0].mxu0 %vm35_vm0, %v20_v4  ;;  %v24_v7 = vld [vmem:[%s291_s3 + $0x8] sm:$0xff]  ;;  %s171_s2 = sshll.u32 %s225_s1, 4  ;;  %s172_s2 = int_to_ptr.vmem [resolvable:$true] %s171_s2 }
   0x7   :  { %s200_s3 = scalar_lea.vmem %s172_s2, 16  ;;  %s204_s28 = scalar_lea.vmem %s172_s2, 32 }
   0x8   :  { %p201_p0 = scmp.ne.s32.totalorder %s172_s2, %s200_s3  ;;  %p205_p1 = scmp.lt.s32.totalorder %s172_s2, %s172_s2 }
   0x9   :  { %32 = vperm.xlu0 %192, %v22_v6   ;;  %p206_p2 = scmp.lt.s32.totalorder %s204_s28, %s200_s3 }
   0xa   :  { %135 = vperm.xlu1 %193, %v24_v7  }
   0xb   :  { %p207_p3 = por %p206_p2, %p205_p1 }
   0xd   :  { %p208_p4 = pnand %p207_p3, %p201_p0 }
  0x84   :  { %v28_v8 = vpop.permute.xlu0 %27 }
  0x85   :  { %v131_v16 = vpop.permute.xlu1 %130 }
  0x88   :  { %v33_v9 = vpop.permute.xlu0 %32 }
  0x89   :  { %v136_v23 = vpop.permute.xlu1 %135 }
  0xd9   :  { %v189_v10 = vpop.f32.mrb[0].mxu0 }
  0xda   :  { %v117_v11 = vadd.f32 %v189_v10, %v33_v9  ;;  %v111_v12 = vpop.f32.mrb[1].mxu0 }
  0xdb   :  { %v112_v13 = vadd.f32 %v111_v12, %v28_v8 }
  0xdc   :  { %v121_v14 = vmul.f32 0.5, %v117_v11 }
  0xdd   :  { %v120_v15 = vmul.f32 0.5, %v112_v13 }
  0xde   :  { %194 = vtanh.f32 %v121_v14 }
  0xdf   :  { %196 = vtanh.f32 %v120_v15 }
  0xe8   :  { %v195_v17 = vpop.eup %194 }
  0xe9   :  { %v197_v18 = vpop.eup %196  ;;  %v125_v19 = vadd.f32 1.0, %v195_v17 }
  0xea   :  { %v124_v20 = vadd.f32 1.0, %v197_v18 }
  0xeb   :  { %v127_v21 = vmul.f32 0.5, %v125_v19 }
  0xec   :  { %v126_v22 = vmul.f32 0.5, %v124_v20 }
  0xed   :  { %v139_v24 = vmul.f32 %v136_v23, %v127_v21 }
  0xee   :  { %v138_v25 = vmul.f32 %v131_v16, %v126_v22 }
  0xef   :  { %v142_v26 = vsel %vm140_vm1, %v139_v24, 0.0 }
  0xf0   :  { %v141_v27 = vsel %vm140_vm1, %v138_v25, 0.0 }
  0xf1   :  { %v143_v28 = vadd.f32 %v142_v26, %v141_v27 }
  0xf3   :  { %v144_v29 = vrot.slane %v143_v28, 4 }
  0xf5   :  { %v145_v30 = vadd.f32 %v144_v29, %v143_v28 }
  0xf7   :  { %v146_v31 = vrot.slane %v145_v30, 2 }
  0xf9   :  { %v147_v32 = vadd.f32 %v146_v31, %v145_v30 }
  0xfb   :  { %v148_v33 = vrot.slane %v147_v32, 1 }
  0xfd   :  { %v149_v34 = vadd.f32 %v148_v33, %v147_v32 }
  0xff   :  { %v150_v35 = vsel %vm140_vm1, %v149_v34, 0.0 }
 0x100   :  { %151 = vadd.xlane.f32.xlu0 %v150_v35 }
 0x18d   :  { %v152_v36 = vpop.xlane.xlu0 %151 }
 0x18e   :  { %v154_v37 = vmul.f32 0.125, %v152_v36 }
 0x190   :  { %v155_v38 = vsub.f32 %v149_v34, %v154_v37 }
 0x192   :  { %v156_v39 = vmul.f32 %v155_v38, %v155_v38 }
 0x194   :  { %v157_v40 = vsel %vm140_vm1, %v156_v39, 0.0 }
 0x195   :  { %158 = vadd.xlane.f32.xlu1 %v157_v40 }
 0x222   :  { %v159_v41 = vpop.xlane.xlu1 %158 }
 0x223   :  { %v160_v42 = vmul.f32 0.125, %v159_v41 }
 0x225   :  { %198 = vrsqrt.f32 %v160_v42 }
 0x22f   :  { %v199_v43 = vpop.eup %198 }
 0x230   :  { %v162_v44 = vmul.f32 %v199_v43, %v155_v38 }
 0x232   :  { %164 = vst.msk [vmem:[#allocation2] sm:$0x1] %vm163_vm2, %v162_v44 }
 0x233   :  { %211 = shalt.err (!%p208_p4)
}
 0x234   :  { %s212_s5 = scalar_lea.hbm %s292_s4, 16 }
 0x235   :  { %p213_p5 = scmp.ne.s32.totalorder %s292_s4, %s212_s5  ;;  %p216_p6 = scmp.lt.u32.totalorder %s212_s5, %s292_s4 }
 0x237   :  { %p218_p7 = pnand %p216_p6, %p213_p5 }
 0x239   :  { %221 = shalt.err (!%p218_p7)
}
 0x23a   :  { %174 = dma.vmem_to_hbm [thread:$0]  %s172_s2, 16, %s292_s4, [#allocation3]  }
 0x23b   :  { %222 = dma.done.wait [#allocation3], 16  }
 0x23c   :  { %223 = vsyncadd [#allocation3], 4294967280 }
 0x23d   :  { %178 = vsyncpa [#allocation3], 1 }

</bundles_post_ra>
